<compile_context>
chip_gen: v7x
topology: tpu7x:2x2x1
jax: 0.10.0
libtpu: 0.0.40
codegen_flags: <defaults>
</compile_context>

<pallas_src>
import functools

import jax
import jax.numpy as jnp
from jax.experimental import pallas as pl
from jax.experimental.pallas import tpu as pltpu


def _round_up(x, m):
    return ((x + m - 1) // m) * m


# ---------------------------------------------------------------------------
# Kernel: one grid step computes one (*, tile_k) tile of the negative logits
# for every query group (q and optionally q_jig) from a single queue stream.
# ---------------------------------------------------------------------------
def _moco_neg_kernel(q_ref, queue_ref, *out_refs, inv_T, bsz):
    """q_ref: (n_out*bsz, n_dim) bf16 resident; queue_ref: (n_dim, tile_k) bf16;
    out_refs[i]: (bsz, tile_k) f32."""
    prod = jax.lax.dot_general(
        q_ref[...],
        queue_ref[...],
        dimension_numbers=(((1,), (0,)), ((), ())),  # contract n_dim; no transpose
        preferred_element_type=jnp.float32,
    )
    prod = prod * inv_T
    for i, o_ref in enumerate(out_refs):
        o_ref[...] = prod[i * bsz:(i + 1) * bsz, :].astype(o_ref.dtype)


def _pick_tile_k(K_pad, n_dim, bsz, n_out):
    """Largest K-tile (multiple of 128, divides K_pad, <= 4096) fitting the VMEM budget,
    preferring an even number (>= 2) of grid steps for the 2-TensorCore v7x split."""
    try:
        vmem_cap = int(pltpu.get_tpu_info().vmem_capacity_bytes)
    except Exception:  # pragma: no cover - conservative fallback
        vmem_cap = 64 * 1024 * 1024
    # Scoped limit: half of physical (v5e/v6e: 64 MiB of 128, v7x: 32 MiB of 64).
    vmem_limit = min(vmem_cap // 2, 100 * 1024 * 1024)

    rows = n_out * bsz
    # Resident bf16 LHS: lanes padded to 128, sublanes to 16, x2 pipeline buffers.
    fixed = 2 * _round_up(rows, 16) * _round_up(n_dim, 128) * 2
    # Per K-column cost: bf16 queue tile (sublanes = n_dim padded to 16) x2 buffers
    # + n_out f32 output tiles (sublanes = bsz padded to 8) x2 buffers.
    per_k = 2 * _round_up(n_dim, 16) * 2 + 2 * n_out * _round_up(bsz, 8) * 4
    headroom = 2 * 1024 * 1024
    budget = max(vmem_limit - fixed - headroom, 128 * per_k)

    max_tile = (budget // per_k) // 128 * 128
    # Streaming roofline plateaus around tile ~512-1024; cap so the grid keeps >= 8-16
    # steps for big K (pipelining granularity + megacore balance on v7x).
    max_tile = max(128, min(max_tile, 4096, K_pad))

    cands = [d for d in range(128, max_tile + 1, 128) if K_pad % d == 0]
    if not cands:
        cands = [128]
    even = [d for d in cands if (K_pad // d) >= 2 and (K_pad // d) % 2 == 0]
    tile_k = max(even) if even else max(cands)
    return tile_k, vmem_limit


def compute_neg_logits_pallas(q_rows, queue_t, T, n_out, bsz):
    """negs[i] = (q_rows[i*bsz:(i+1)*bsz] @ queue_t) / T, tiled over the K (lane) axis.

    q_rows: (n_out*bsz, n_dim) bf16; queue_t: (n_dim, K) bf16 (memory stored transposed).
    Returns a tuple of n_out arrays of shape (bsz, K), float32.
    """
    rows, n_dim = q_rows.shape
    _, K = queue_t.shape
    K_pad = _round_up(K, 128)
    if K_pad != K:
        # Rare path (canonical MoCo K is a power of two): pad lanes, slice off below.
        queue_t = jnp.pad(queue_t, ((0, 0), (0, K_pad - K)))

    tile_k, vmem_limit = _pick_tile_k(K_pad, n_dim, bsz, n_out)
    assert K_pad % tile_k == 0
    grid = (K_pad // tile_k,)

    kernel = functools.partial(_moco_neg_kernel, inv_T=1.0 / float(T), bsz=bsz)

    out_shape = tuple(
        jax.ShapeDtypeStruct((bsz, K_pad), jnp.float32) for _ in range(n_out)
    )
    out_specs = [pl.BlockSpec((bsz, tile_k), lambda j: (0, j)) for _ in range(n_out)]

    cost = pl.CostEstimate(
        flops=2 * rows * K_pad * n_dim,
        transcendentals=0,
        bytes_accessed=int(
            rows * n_dim * 2 + n_dim * K_pad * 2 + n_out * bsz * K_pad * 4
        ),
    )

    negs = pl.pallas_call(
        kernel,
        out_shape=out_shape,
        grid_spec=pltpu.PrefetchScalarGridSpec(
            num_scalar_prefetch=0,
            grid=grid,
            in_specs=[
                pl.BlockSpec((rows, n_dim), lambda j: (0, 0)),    # fused q rows, resident
                pl.BlockSpec((n_dim, tile_k), lambda j: (0, j)),  # lane-dense queue tile
            ],
            out_specs=out_specs,
        ),
        compiler_params=pltpu.CompilerParams(
            dimension_semantics=("parallel",),   # independent tiles -> megacore on v7x
            vmem_limit_bytes=int(vmem_limit),
        ),
        cost_estimate=cost,
    )(q_rows, queue_t)

    if K_pad != K:
        negs = tuple(n[:, :K] for n in negs)
    return negs


@functools.partial(jax.jit, static_argnames=("T", "bsz", "n_out"))
def _moco_forward(q_rows, k, queue_t, *, T, bsz, n_out):
    """Fused logits for n_out query groups sharing one queue stream."""
    inv_T = 1.0 / float(T)
    negs = compute_neg_logits_pallas(q_rows.astype(queue_t.dtype), queue_t, T, n_out, bsz)
    outs = []
    for i in range(n_out):
        q_i = jax.lax.slice_in_dim(q_rows, i * bsz, (i + 1) * bsz, axis=0)
        pos = jnp.sum(q_i * k, axis=-1, keepdims=True) * inv_T  # row-wise q.k (f32)
        # TODO(synk): downstream losses could consume (pos, neg) unconcatenated to save
        # one (bsz, 1+K) HBM round-trip; kept concatenated to match module semantics.
        outs.append(jnp.concatenate([pos, negs[i]], axis=1))
    return tuple(outs)


@functools.partial(jax.jit, donate_argnums=(0,))
def _ring_update(memory_t, new_k, idx):
    """Contiguous ring-buffer write of new_k (num, n_dim) as columns of (n_dim, K)
    memory starting at `idx`.  The memory buffer is donated -> in-place update."""
    new_cols = new_k.astype(memory_t.dtype).T
    return jax.lax.dynamic_update_slice(memory_t, new_cols, (0, idx))


class RGBMoCoPallas:
    """JAX/Pallas port of RGBMoCo (single-modal MoCo memory cache)."""

    def __init__(self, n_dim, K=65536, T=0.07, seed=123, memory_dtype=jnp.bfloat16):
        self.K = K
        self.T = T
        self.n_dim = n_dim
        self.index = 0
        # register_buffer('memory', randn(K, n_dim)); memory = F.normalize(memory)
        key = jax.random.PRNGKey(seed)
        mem = jax.random.normal(key, (K, n_dim), dtype=jnp.float32)
        mem = mem / jnp.maximum(jnp.linalg.norm(mem, axis=1, keepdims=True), 1e-12)
        # Stored transposed (n_dim, K) + bf16: lane-dense queue tiles, half the HBM read.
        self.memory = mem.T.astype(memory_dtype)

    def queue_kd(self):
        """(K, n_dim) float32 copy of the memory queue (for inspection / references)."""
        return self.memory.astype(jnp.float32).T

    # -- functional-state glue -------------------------------------------------
    def _update_pointer(self, bsz):
        self.index = (self.index + bsz) % self.K

    def _update_memory(self, all_k):
        """Ring-buffer write via 1-2 donated (in-place) dynamic_update_slice calls."""
        num_neg = all_k.shape[0]
        idx = int(self.index)
        end = idx + num_neg
        if end <= self.K:
            self.memory = _ring_update(self.memory, all_k, idx)
        else:
            first = self.K - idx
            self.memory = _ring_update(self.memory, all_k[:first], idx)
            self.memory = _ring_update(self.memory, all_k[first:], 0)

    # -- forward ---------------------------------------------------------------
    def __call__(self, q, k, q_jig=None, all_k=None):
        bsz = q.shape[0]
        k = jax.lax.stop_gradient(k)
        queue_t = jax.lax.stop_gradient(self.memory)  # memory.clone().detach()

        if q_jig is not None:
            # Fuse both query sets: queue streamed from HBM once, two kernel outputs.
            q_rows = jnp.concatenate([q, q_jig], axis=0)
            logits, logits_jig = _moco_forward(
                q_rows, k, queue_t, T=self.T, bsz=bsz, n_out=2)
        else:
            (logits,) = _moco_forward(q, k, queue_t, T=self.T, bsz=bsz, n_out=1)
            logits_jig = None

        labels = jnp.zeros((bsz,), dtype=jnp.int32)  # torch.long -> int32 (no x64)

        all_k = all_k if all_k is not None else k
        self._update_memory(all_k)
        self._update_pointer(all_k.shape[0])

        if q_jig is not None:
            return logits, logits_jig, labels
        return logits, labels


# ---------------------------------------------------------------------------
# Reference (mirrors the kernel's bf16-queue / bf16-query, f32-accumulate math).
# ---------------------------------------------------------------------------
def _reference_logits(q, k, queue_t_bf16, T):
    inv_T = 1.0 / float(T)
    pos = jnp.sum(q * k, axis=-1, keepdims=True) * inv_T
    neg = jax.lax.dot_general(
        q.astype(queue_t_bf16.dtype), queue_t_bf16,
        dimension_numbers=(((1,), (0,)), ((), ())),
        preferred_element_type=jnp.float32,
    ) * inv_T
    return jnp.concatenate([pos, neg], axis=1)


if __name__ == "__main__":
    bsz, n_dim, K, T = 8, 32, 512, 0.07

    key = jax.random.PRNGKey(0)
    kq, kk, kj = jax.random.split(key, 3)

    def l2norm(x):
        return x / jnp.maximum(jnp.linalg.norm(x, axis=1, keepdims=True), 1e-12)

    q = l2norm(jax.random.normal(kq, (bsz, n_dim), dtype=jnp.float32))
    k = l2norm(jax.random.normal(kk, (bsz, n_dim), dtype=jnp.float32))
    q_jig = l2norm(jax.random.normal(kj, (bsz, n_dim), dtype=jnp.float32))

    moco = RGBMoCoPallas(n_dim, K=K, T=T)
    queue_snap = jnp.copy(moco.memory)  # (n_dim, K) bf16 snapshot (memory gets donated)

    # ---- path without jigsaw query -------------------------------------------
    logits, labels = moco(q, k)
    logits = jax.block_until_ready(logits)
    labels = jax.block_until_ready(labels)

    assert logits.shape == (bsz, 1 + K)
    assert labels.shape == (bsz,)

    ref = _reference_logits(q, k, queue_snap, T)
    assert jnp.allclose(logits, ref, atol=1e-3, rtol=1e-3), "logits mismatch"

    # Memory update check (ring-buffer write at columns 0..bsz-1, pointer advanced)
    assert jnp.allclose(moco.memory[:, :bsz].astype(jnp.float32),
                        k.T.astype(jnp.bfloat16).astype(jnp.float32))
    assert moco.index == bsz

    # ---- path with jigsaw query (fused q/q_jig, two kernel outputs) ----------
    queue_snap2 = jnp.copy(moco.memory)
    logits2, logits_jig, labels2 = moco(q, k, q_jig=q_jig)
    logits2 = jax.block_until_ready(logits2)
    logits_jig = jax.block_until_ready(logits_jig)

    ref2 = _reference_logits(q, k, queue_snap2, T)
    ref_jig = _reference_logits(q_jig, k, queue_snap2, T)
    assert jnp.allclose(logits2, ref2, atol=1e-3, rtol=1e-3)
    assert jnp.allclose(logits_jig, ref_jig, atol=1e-3, rtol=1e-3)
    assert moco.index == 2 * bsz

    # ---- exercise the ring wrap-around of the in-place memory update ---------
    moco.index = K - bsz // 2
    moco._update_memory(k)
    k_bf = k.astype(jnp.bfloat16).astype(jnp.float32)
    assert jnp.allclose(moco.memory[:, K - bsz // 2:].astype(jnp.float32),
                        k_bf[: bsz // 2].T)
    assert jnp.allclose(moco.memory[:, : bsz - bsz // 2].astype(jnp.float32),
                        k_bf[bsz // 2:].T)

    print("KERNEL_OK")
</pallas_src>

<mosaic_0001>
module attributes {stable_mosaic.version = 11 : i64} {
  func.func @_moco_neg_kernel(%arg0: i32, %arg1: memref<8x32xbf16, #tpu.memory_space<vmem>>, %arg2: memref<32x256xbf16, #tpu.memory_space<vmem>>, %arg3: memref<8x256xf32, #tpu.memory_space<vmem>>) attributes {dimension_semantics = [#tpu.dimension_semantics<parallel>], iteration_bounds = array<i64: 2>, scalar_prefetch = 0 : i64, scratch_operands = 0 : i64, tpu.core_type = #tpu.core_type<tc>, window_params = [{pipeline_mode = #tpu.pipeline_mode<synchronous>, transform_indices = @transform_0, window_bounds = array<i64: 8, 32>}, {transform_indices = @transform_1, window_bounds = array<i64: 32, 256>}, {transform_indices = @transform_2, window_bounds = array<i64: 8, 256>}]} {
    %c0 = arith.constant 0 : index
    %c0_0 = arith.constant 0 : index
    %0 = vector.load %arg1[%c0, %c0_0] : memref<8x32xbf16, #tpu.memory_space<vmem>>, vector<8x32xbf16>
    %c0_1 = arith.constant 0 : index
    %c0_2 = arith.constant 0 : index
    %1 = vector.load %arg2[%c0_1, %c0_2] : memref<32x256xbf16, #tpu.memory_space<vmem>>, vector<32x256xbf16>
    %cst = arith.constant dense<0.000000e+00> : vector<8x256xf32>
    %2 = tpu.matmul %0, %1, %cst {dimension_numbers = #tpu.dot_dimension_numbers<[1], [0], [0], [1], [0, 0, 1, 1], [], []>} : vector<8x32xbf16>, vector<32x256xbf16>, vector<8x256xf32> -> vector<8x256xf32>
    %cst_3 = arith.constant 14.2857141 : f32
    %3 = vector.broadcast %cst_3 : f32 to vector<8x256xf32>
    %4 = arith.mulf %2, %3 : vector<8x256xf32>
    %c0_4 = arith.constant 0 : index
    %c0_5 = arith.constant 0 : index
    %5 = vector.load %arg3[%c0_4, %c0_5] : memref<8x256xf32, #tpu.memory_space<vmem>>, vector<8x256xf32>
    tpu.vector_store %arg3[%c0_4, %c0_5], %4 {strides = array<i32>} : memref<8x256xf32, #tpu.memory_space<vmem>>, vector<8x256xf32>,
    return
  }
  func.func @transform_0(%arg0: i32) -> (i32, i32) {
    %c0_i32 = arith.constant 0 : i32
    %c0_i32_0 = arith.constant 0 : i32
    %c0_i32_1 = arith.constant 0 : i32
    return %c0_i32, %c0_i32_0 : i32, i32
  }
  func.func @transform_1(%arg0: i32) -> (i32, i32) {
    %c0_i32 = arith.constant 0 : i32
    %c0_i32_0 = arith.constant 0 : i32
    return %c0_i32, %arg0 : i32, i32
  }
  func.func @transform_2(%arg0: i32) -> (i32, i32) {
    %c0_i32 = arith.constant 0 : i32
    %c0_i32_0 = arith.constant 0 : i32
    return %c0_i32, %arg0 : i32, i32
  }
}

</mosaic_0001>

<bundles_post_ra>
// kernel: _moco_forward.1
= control target key start
LH: loop header
LB: loop body
LE: loop exit
PB: predicated region body
PF: predicated region fallthrough
CT: control target
= control target key end

     0   :  { %7 = vsyncpa [#allocation3], 0  ;;  %s570_s0 = inlined_call_operand.vmem [shape: bf16[8,32], index: 0, kind: input, shape index: {}]   ;;  %s571_s1 = inlined_call_operand.hbm [shape: bf16[32,512], index: 1, kind: input, shape index: {}]   ;;  %s572_s2 = inlined_call_operand.vmem [shape: f32[8,512], index: 2, kind: output, shape index: {}]  }
   0x1   :  { %9 = vsyncpa [#allocation3 + $0x1], 0  ;;  %s462_s9 = smov 0   ;;  %s464_s10 = smov 0  }
   0x2   :  { %s466_s11 = smov 0   ;;  %s468_s12 = smov 0  }
   0x3 LB: > { %s308_s13 = sadd.s32 4294967295, %s440_s12   ;;  %s482_s14 = sadd.s32 1, %s440_s12   ;;  %s440_s12 = sphi %s468_s12, %s578_s12   ;;  %s436_s11 = sphi %s466_s11, %s577_s11   ;;  %s432_s10 = sphi %s464_s10, %s576_s10   ;;  %s428_s9 = sphi %s462_s9, %s575_s9  }
   0x4   : > { %s40_s15 = ssub.s32 %s440_s12, %s482_s14  ;;  %s43_s16 = sadd.s32 1, %s436_s11 }
   0x5   : > { %p41_p0 = scmp.eq.s32.totalorder %s40_s15, 0  ;;  %p50_p1 = scmp.ne.s32.totalorder %s436_s11, %s432_s10 }
   0x6   : > { %p51_p2 = scmp.eq.s32.totalorder %s440_s12, 0  ;;  %p56_p3 = scmp.ne.s32.totalorder %s432_s10, %s428_s9 }
   0x7   : > { %s492_s17 = scalar_select %p41_p0, %s436_s11, %s43_s16  }
   0x8   : > { %p52_p4 = por %p51_p2, %p50_p1  ;;  %p57_p5 = scmp.eq.s32.totalorder %s308_s13, 0 }
   0x9   : > { %p333_p6 = scmp.lt.s32.totalorder %s440_s12, 2  ;;  %s109_s19 = sand.u32 1, %s436_s11  }
   0xa   : > { %p497_p7 = por %p57_p5, %p56_p3  ;;  %s312_s20 = sshll.u32 %s109_s19, 5 }
   0xb   : > { %s326_s21 = sshll.u32 %s440_s12, 7  ;;  %s113_s25 = scalar_lea.vmem [#allocation2], %s312_s20 }
   0xc   : > { %s506_s24 = scalar_lea.hbm %s571_s1, %s326_s21  ;;  %s120_s26 = sshll.u32 %s113_s25, 4  ;;  %s508_s26 = int_to_ptr.vmem [resolvable:$true] %s120_s26 }
   0xd   : > { %p510_p8 = pnand %p333_p6, %p52_p4  ;;  %s514_s28 = scalar_lea.sflag [#allocation3], %s109_s19 }
   0xe   : > { %s376_s29 = scalar_lea.hbm %s506_s24, 512  ;;  %s381_s4 = scalar_lea.hbm %s571_s1, 1024 }
   0xf   : > { %p377_p9 = scmp.ne.s32.totalorder %s506_s24, %s376_s29  ;;  %p378_p10 = pneg %p510_p8 }
  0x10   : > { %p382_p13 = scmp.lt.u32.totalorder %s506_s24, %s571_s1  ;;  %p383_p0 = scmp.lt.u32.totalorder %s381_s4, %s376_s29 }
  0x11   : > { %p379_p11 = pnand %p378_p10, %p377_p9  ;;  %p385_p2 = scmp.lt.u32.totalorder %s376_s29, %s506_s24 }
  0x12   : > { %p384_p1 = por %p383_p0, %p382_p13 }
  0x13   : > { %p380_p12 = pneg %p379_p11 }
  0x14   : > { %p386_p3 = por %p385_p2, %p384_p1 }
  0x16   : > { %p387_p4 = pnand %p386_p3, %p380_p12 }
  0x18   : > { %390 = shalt.err (!%p387_p4)
}
  0x19   : > { %s391_s7 = scalar_lea.vmem %s508_s26, 512  ;;  %s442_s8 = smov [#allocation2]  }
  0x1a   : > { %p392_p5 = scmp.ne.s32.totalorder %s508_s26, %s391_s7  ;;  %s396_s9 = sshll.u32 %s442_s8, 4  ;;  %s397_s9 = int_to_ptr.vmem [resolvable:$false] %s396_s9 }
  0x1b   : > { %s398_s15 = scalar_lea.vmem %s397_s9, 1024  ;;  %p399_p11 = scmp.lt.s32.totalorder %s508_s26, %s397_s9 }
  0x1c   : > { %p394_p6 = pnand %p392_p5, %p378_p10  ;;  %p400_p13 = scmp.lt.s32.totalorder %s398_s15, %s391_s7 }
  0x1e   : > { %p395_p9 = pneg %p394_p6  ;;  %p401_p0 = por %p400_p13, %p399_p11 }
  0x20   : > { %p402_p1 = pnand %p401_p0, %p395_p9 }
  0x22   : > { %405 = shalt.err (!%p402_p1)
}
  0x23   : > { %s443_s16 = smov 256   ;;  %s444_s19 = smov 128  }
  0x24   : > { %s445_s20 = smov 8   ;;  %p315_p10 = scmp.ge.s32.totalorder %s440_s12, 1 }
  0x25   : > { %332 = dma.hbm_to_vmem [thread:$0]  (!%p510_p8), %s506_s24, 512, %s508_s26, %s514_s28, %s443_s16, %s444_s19, %s445_s20  }
  0x26   : > { %p128_p12 = scmp.lt.s32.totalorder %s440_s12, 3 }
  0x28   : > { %p129_p2 = pnand %p315_p10, %p128_p12 }
  0x29   : > { %s134_s21 = sand.u32 (!%p129_p2), 1, %s432_s10  }
  0x2a   : > { %132 = sbr.rel (%p129_p2) target bundleno = 275 (0x113), region = 28  ;;  %s316_s22 = sshll.u32 (!%p129_p2), %s134_s21, 5 }
  0x2b   : > { %s135_s23 = scalar_lea.sflag (!%p129_p2), [#allocation3], %s134_s21  ;;  %s138_s25 = scalar_lea.vmem (!%p129_p2), [#allocation2], %s316_s22 }
  0x31   : > { %423 = dma.done.wait (%p497_p7), %s135_s23, 512  }
  0x32   : > { %425 = vsyncadd (%p497_p7), %s135_s23, 4294966784  ;;  %v446_v0 = vmov 0   ;;  %v370_v1 = vld [vmem:[%s138_s25 + $0x4] ss:$8 sps:$4 sm:$0xff]   ;;  %v372_v2 = vld [vmem:[%s138_s25] ss:$8 sps:$4 sm:$0xff]  }
  0x33   : > { %228 = vmatprep.mubr.bf16.mxu0 %v446_v0  ;;  %196 = vmatprep.subr.bf16.mxu0 %v370_v1  ;;  %v373_v3 = vld [vmem:[%s138_s25 + $0x14] ss:$8 sps:$4 sm:$0xff]   ;;  %v375_v4 = vld [vmem:[%s138_s25 + $0x10] ss:$8 sps:$4 sm:$0xff]   ;;  %vm192_vm0 = vcmask 261120   ;;  %s317_s18 = sshll.u32 %s308_s13, 1 }
  0x34   : > { %197 = vmatpush1.bf16.msra.mxu0 %v372_v2  ;;  %v167_v5 = vld [vmem:[%s570_s0] sm:$0xf]  ;;  %p161_p7 = scmp.lt.s32.totalorder %s317_s18, 3 }
  0x35   : > { %198 = vmatprep.subr.bf16.mxu0 %v373_v3 }
  0x36   : > { %s580_s18 = smov (!%p161_p7, %s317_s18), 3 }
  0x37   : > { %s318_s27 = sshll.u32 %s580_s18, 3 }
  0x38   : > { %199 = vmatpush1.bf16.msra.mxu0 %v375_v4  ;;  %s164_s30 = scalar_lea.vmem %s572_s2, %s318_s27 }
  0x3b   : > { %323 = vmatmul.mubr.msk.bf16.vlgmr.msra.gmra.mrb[0].mxu0 %vm192_vm0, %v167_v5 }
 0x10e   : > { %v230_v6 = vpop.f32.mrb[0].mxu0 }
 0x10f   : > { %v237_v7 = vmul.f32 14.285714, %v230_v6  ;;  %v232_v8 = vpop.f32.mrb[1].mxu0 }
 0x110   : > { %v238_v9 = vmul.f32 14.285714, %v232_v8  ;;  %v234_v10 = vpop.f32.mrb[2].mxu0 }
 0x111   : > { %239 = vst [vmem:[%s164_s30] sm:$0xff] %v237_v7  ;;  %v235_v11 = vpop.f32.mrb[3].mxu0 }
 0x112   : > { %240 = vst [vmem:[%s164_s30 + $0x8] sm:$0xff] %v238_v9 }
 0x113 PF: > { %p12_p8 = scmp.ge.s32.totalorder %s482_s14, 4   ;;  %s575_s9 = smov %s432_s10 }
 0x114   : > { %s576_s10 = smov %s436_s11  ;;  %s577_s11 = smov %s492_s17 }
 0x115   : > { %s578_s12 = smov %s482_s14  ;;  %14 = sbr.rel (!%p12_p8) target bundleno = 3 (0x3), region = 68 }
 0x11c   :  { %263 = vsyncpa [#allocation3], 1 }
 0x11d   :  { %265 = vsyncpa [#allocation3 + $0x1], 1 }

</bundles_post_ra>
